<compile_context>
chip_gen: v5e
topology: v5e:2x2
jax: 0.10.0
libtpu: 0.0.40
codegen_flags: <defaults>
</compile_context>

<pallas_src>
import numpy as np
import jax
import jax.numpy as jnp
from jax.experimental import pallas as pl
from jax.experimental.pallas import tpu as pltpu


_VMEM_LIMIT_BYTES = 32 * 1024 * 1024   # explicit; well under v7x's 64 MiB physical VMEM
_TILE_BUDGET_BYTES = 2 << 20           # ~2 MiB x-tile -> ~85% of HBM roofline, 6x = 12 MiB pipelined


# ----------------------------------------------------------------------------
# Kernel: pure element-wise (broadcasting) add — VPU only, no relayouts.
# Used for both the 2-D lane-dense slab path and the 3-D (seq, batch, d_model)
# path (where pe_ref is (ts, 1, D) and broadcasts over batch inside VMEM).
# ----------------------------------------------------------------------------
def _add_kernel(x_ref, pe_ref, o_ref):
    o_ref[...] = x_ref[...] + pe_ref[...]


# ----------------------------------------------------------------------------
# pe buffer construction — identical to the PyTorch __init__ (registered buffer
# of shape (max_len, 1, d_model)); stored in the activation dtype.
# ----------------------------------------------------------------------------
def make_pe(d_model, max_len=5000, dtype=jnp.float32):
    position = np.arange(max_len, dtype=np.float32)[:, None]
    div_term = np.exp(np.arange(0, d_model, 2, dtype=np.float32)
                      * (-np.log(10000.0) / d_model))
    pe = np.zeros((max_len, d_model), np.float32)
    pe[:, 0::2] = np.sin(position * div_term)
    pe[:, 1::2] = np.cos(position * div_term)
    return jnp.asarray(pe, dtype=dtype)[:, None, :]          # (max_len, 1, d_model)


# ----------------------------------------------------------------------------
# Tiling helpers.
# ----------------------------------------------------------------------------
def _pick_tile_rows(rows, row_bytes, *, budget_bytes=_TILE_BUDGET_BYTES,
                    min_steps=4, granule=8):
    """Rows per block: capped by a VMEM byte budget (double-buffered x/pe/out
    tiles) and small enough that the grid has >= min_steps steps so
    dimension_semantics=("parallel",) can shard across the 2 TCs on v7x."""
    if rows <= granule:
        return rows                                           # block == full dim (legal)
    budget_rows = max(granule, (budget_bytes // max(row_bytes, 1)) // granule * granule)
    par_rows = -(-rows // min_steps)                          # ceil(rows / min_steps)
    par_rows = max(granule, -(-par_rows // granule) * granule)
    return max(granule, min(budget_rows, par_rows, rows))


def _pick_lane_cols(n):
    """Largest lane-dense column count (multiple of 128) that divides n."""
    for c in (2048, 1024, 512, 256, 128):
        if n % c == 0:
            return c
    return None


# ----------------------------------------------------------------------------
# pallas_call wrappers for the two layouts.
# ----------------------------------------------------------------------------
def _call_2d(x2, pe2):
    rows, cols = x2.shape
    dsize = x2.dtype.itemsize
    tr = _pick_tile_rows(rows, cols * dsize, granule=8)
    nbytes = rows * cols * dsize
    return pl.pallas_call(
        _add_kernel,
        out_shape=jax.ShapeDtypeStruct((rows, cols), x2.dtype),
        grid=(pl.cdiv(rows, tr),),
        in_specs=[pl.BlockSpec((tr, cols), lambda i: (i, 0)),   # x slab tile
                  pl.BlockSpec((tr, cols), lambda i: (i, 0))],  # pe slab tile
        out_specs=pl.BlockSpec((tr, cols), lambda i: (i, 0)),
        input_output_aliases={0: 0},                            # write y over x
        cost_estimate=pl.CostEstimate(flops=rows * cols,
                                      bytes_accessed=3 * nbytes,
                                      transcendentals=0),
        compiler_params=pltpu.CompilerParams(
            dimension_semantics=("parallel",),
            vmem_limit_bytes=_VMEM_LIMIT_BYTES),
    )(x2, pe2)


def _call_3d(x, pe_rows):
    S, B, D = x.shape
    dsize = x.dtype.itemsize
    ts = _pick_tile_rows(S, B * D * dsize, granule=1)           # leading dim: no (8,128) rule
    return pl.pallas_call(
        _add_kernel,
        out_shape=jax.ShapeDtypeStruct((S, B, D), x.dtype),
        grid=(pl.cdiv(S, ts),),
        in_specs=[pl.BlockSpec((ts, B, D), lambda i: (i, 0, 0)),   # x tile
                  pl.BlockSpec((ts, 1, D), lambda i: (i, 0, 0))],  # pe rows (bcast in VMEM)
        out_specs=pl.BlockSpec((ts, B, D), lambda i: (i, 0, 0)),
        input_output_aliases={0: 0},
        cost_estimate=pl.CostEstimate(flops=S * B * D,
                                      bytes_accessed=(2 * S * B * D + S * D) * dsize,
                                      transcendentals=0),
        compiler_params=pltpu.CompilerParams(
            dimension_semantics=("parallel",),
            vmem_limit_bytes=_VMEM_LIMIT_BYTES),
    )(x, pe_rows)


# ----------------------------------------------------------------------------
# Module forward: y = x + pe[:S]   (eval-mode dropout == identity)
# ----------------------------------------------------------------------------
def positional_encoding(x, pe):
    S, B, D = x.shape
    max_len = pe.shape[0]
    assert S <= max_len, f"sequence length {S} exceeds max_len {max_len}"
    assert pe.shape[2] == D
    if pe.dtype != x.dtype:
        pe = pe.astype(x.dtype)            # narrower pe DMA for bf16 activations

    if D % 128 == 0:
        # d_model already lane-dense: keep D last, stream only S*D pe bytes.
        return _call_3d(x, pe[:S])

    cols = _pick_lane_cols(S * B * D)
    if cols is not None:
        # d_model < 128 (or not a lane multiple): pre-broadcast pe over batch and
        # fold (S, B, D) into a lane-dense 2-D slab -> unmasked full-width stores,
        # no padded VMEM/DMA traffic (biggest single lever per the perf review).
        rows = (S * B * D) // cols
        x2 = x.reshape(rows, cols)
        pe2 = jnp.broadcast_to(pe[:S], (S, B, D)).reshape(rows, cols)
        return _call_2d(x2, pe2).reshape(S, B, D)

    # Odd shapes with no lane-dense fold: correct but padded fallback.
    return _call_3d(x, pe[:S])


if __name__ == "__main__":
    d_model = 32
    max_len = 5000
    pe = make_pe(d_model, max_len)

    # (seq, batch, d_model), seq-first as in PyTorch batch_first=False usage.
    key = jax.random.PRNGKey(0)
    x = jax.random.normal(key, (8, 2, d_model), jnp.float32)
    y = jax.block_until_ready(positional_encoding(x, pe))
    ref = x + pe[: x.shape[0]]                    # eval-mode dropout == identity
    assert y.shape == x.shape, y.shape
    assert bool(jnp.all(jnp.isfinite(y)))
    assert bool(jnp.allclose(y, ref, rtol=0.0, atol=0.0)), "mismatch vs reference"

    # Larger shape: lane-dense folded path, multi-step grid, partial last tile.
    x2 = jax.random.normal(jax.random.PRNGKey(1), (600, 4, d_model), jnp.float32)
    y2 = jax.block_until_ready(positional_encoding(x2, pe))
    ref2 = x2 + pe[: x2.shape[0]]
    assert y2.shape == x2.shape, y2.shape
    assert bool(jnp.allclose(y2, ref2, rtol=0.0, atol=0.0)), "mismatch vs reference (folded)"

    # d_model multiple of 128: lane-dense 3-D path with in-VMEM pe broadcast.
    d3 = 128
    pe3 = make_pe(d3, max_len)
    x3 = jax.random.normal(jax.random.PRNGKey(2), (16, 4, d3), jnp.float32)
    y3 = jax.block_until_ready(positional_encoding(x3, pe3))
    ref3 = x3 + pe3[: x3.shape[0]]
    assert y3.shape == x3.shape, y3.shape
    assert bool(jnp.allclose(y3, ref3, rtol=0.0, atol=0.0)), "mismatch vs reference (3-D)"

    print("KERNEL_OK")
</pallas_src>

<mosaic_0001>
module attributes {stable_mosaic.version = 11 : i64} {
  func.func @_add_kernel(%arg0: i32, %arg1: memref<1x512xf32, #tpu.memory_space<vmem>>, %arg2: memref<1x512xf32, #tpu.memory_space<vmem>>, %arg3: memref<1x512xf32, #tpu.memory_space<vmem>>) attributes {dimension_semantics = [#tpu.dimension_semantics<parallel>], iteration_bounds = array<i64: 1>, scalar_prefetch = 0 : i64, scratch_operands = 0 : i64, tpu.core_type = #tpu.core_type<tc>, window_params = [{transform_indices = @transform_0, window_bounds = array<i64: 1, 512>}, {transform_indices = @transform_1, window_bounds = array<i64: 1, 512>}, {transform_indices = @transform_2, window_bounds = array<i64: 1, 512>}]} {
    %c0 = arith.constant 0 : index
    %c0_0 = arith.constant 0 : index
    %0 = vector.load %arg1[%c0, %c0_0] : memref<1x512xf32, #tpu.memory_space<vmem>>, vector<1x512xf32>
    %c0_1 = arith.constant 0 : index
    %c0_2 = arith.constant 0 : index
    %1 = vector.load %arg2[%c0_1, %c0_2] : memref<1x512xf32, #tpu.memory_space<vmem>>, vector<1x512xf32>
    %2 = arith.addf %0, %1 : vector<1x512xf32>
    %c0_3 = arith.constant 0 : index
    %c0_4 = arith.constant 0 : index
    %3 = vector.load %arg3[%c0_3, %c0_4] : memref<1x512xf32, #tpu.memory_space<vmem>>, vector<1x512xf32>
    tpu.vector_store %arg3[%c0_3, %c0_4], %2 {strides = array<i32>} : memref<1x512xf32, #tpu.memory_space<vmem>>, vector<1x512xf32>,
    return
  }
  func.func @transform_0(%arg0: i32) -> (i32, i32) {
    %c0_i32 = arith.constant 0 : i32
    %c0_i32_0 = arith.constant 0 : i32
    return %arg0, %c0_i32 : i32, i32
  }
  func.func @transform_1(%arg0: i32) -> (i32, i32) {
    %c0_i32 = arith.constant 0 : i32
    %c0_i32_0 = arith.constant 0 : i32
    return %arg0, %c0_i32 : i32, i32
  }
  func.func @transform_2(%arg0: i32) -> (i32, i32) {
    %c0_i32 = arith.constant 0 : i32
    %c0_i32_0 = arith.constant 0 : i32
    return %arg0, %c0_i32 : i32, i32
  }
}

</mosaic_0001>

<bundles_post_ra>
// kernel: tpu_custom_call.1
= control target key start
LH: loop header
LB: loop body
LE: loop exit
PB: predicated region body
PF: predicated region fallthrough
CT: control target
= control target key end

     0   :  { %7 = vsyncpa [#allocation3], 0  ;;  %s131_s0 = inlined_call_operand.hbm [shape: f32[1,512], index: 0, kind: input, shape index: {}, may-alias: {0,2}]   ;;  %s132_s1 = inlined_call_operand.vmem [shape: f32[1,512], index: 1, kind: input, shape index: {}]   ;;  %s133_s2 = inlined_call_operand.hbm [shape: f32[1,512], index: 2, kind: output, shape index: {}, may-alias: {0,2}]  }
   0x1   :  { %8 = vsyncpa [#allocation4], 0  ;;  %s14_s11 = sshll.u32 %s131_s0, 4  ;;  %s105_s12 = smov [#allocation2]   ;;  %s15_s11 = int_to_ptr.hbm [resolvable:$true] %s14_s11 }
   0x2   :  { %s16_s13 = sshll.u32 %s105_s12, 4  ;;  %s17_s13 = int_to_ptr.vmem [resolvable:$true] %s16_s13 }
   0x3   :  { %19 = dma.hbm_to_vmem [thread:$0]  %s15_s11, 64, %s17_s13, [#allocation3]  }
   0x4   :  { %101 = dma.done.wait [#allocation3], 64  }
   0x5   :  { %102 = vsyncadd [#allocation3], 4294967232  ;;  %v29_v0 = vlaneseq  ;;  %s106_s14 = smov [#allocation5]   ;;  %s41_s18 = sshll.u32 %s133_s2, 4  ;;  %v26_v1 = vld [vmem:[#allocation2] sm:$0xf]  ;;  %s42_s18 = int_to_ptr.hbm [resolvable:$true] %s41_s18 }
   0x6   :  { %s39_s15 = sshll.u32 %s106_s14, 4  ;;  %v27_v2 = vld [vmem:[%s132_s1] sm:$0xf]  ;;  %s40_s15 = int_to_ptr.vmem [resolvable:$true] %s39_s15 }
   0x7   :  { %vm31_vm0 = vcmp.lt.s32.totalorder %v29_v0, 512  ;;  %v28_v3 = vadd.f32 %v27_v2, %v26_v1 }
   0x9   :  { %33 = vst.msk [vmem:[#allocation5] sm:$0xf] %vm31_vm0, %v28_v3 }
   0xa   :  { %44 = dma.vmem_to_hbm [thread:$0]  %s40_s15, 64, %s42_s18, [#allocation4]  }
   0xb   :  { %103 = dma.done.wait [#allocation4], 64  }
   0xc   :  { %104 = vsyncadd [#allocation4], 4294967232 }
   0xd   :  { %49 = vsyncpa [#allocation3], 1 }
   0xe   :  { %50 = vsyncpa [#allocation4], 1 }

</bundles_post_ra>
